<compile_context>
chip_gen: v6e
topology: v6e:2x2x1
jax: 0.10.0
libtpu: 0.0.40
codegen_flags: <defaults>
</compile_context>

<pallas_src>
import jax
import jax.numpy as jnp
from jax.experimental import pallas as pl
from jax.experimental.pallas import tpu as pltpu


def _ada_res_norm_kernel(x_ref, a_ref, b_ref, beta_ref, eps_ref, o_ref):
    # x_ref: (TR, C*W)  rows = (n, h) pairs, lanes = flattened (c, w)
    xf = x_ref[...].astype(jnp.float32)
    n_red = xf.shape[1]

    mean = jnp.mean(xf, axis=1, keepdims=True)                      # (TR, 1)
    centered = xf - mean
    # unbiased variance (matches torch.var default)
    var = jnp.sum(centered * centered, axis=1, keepdims=True) * (1.0 / (n_red - 1))

    # eps is per-channel, already broadcast to a lane vector (1, C*W)
    inv = jax.lax.rsqrt(var + eps_ref[...])                          # EUP slot

    # fused affine: gamma*(rho*x + (1-rho)*ifn) + beta
    #             = a*x + b*(centered*inv) + beta  with a=gamma*rho, b=gamma*(1-rho)
    out = a_ref[...] * xf + b_ref[...] * (centered * inv) + beta_ref[...]
    o_ref[...] = out.astype(o_ref.dtype)


def _pick_row_tile(n_rows, lane_width, itemsize, max_tile_bytes=4 * 1024 * 1024):
    # Largest row tile that (a) evenly divides the row count, (b) is a multiple
    # of 8 (sublane constraint), and (c) stays within a ~4 MiB VMEM budget so
    # double-buffered in+out tiles fit comfortably even on v7x (64 MiB VMEM).
    for t in (1024, 512, 256, 128, 64, 32, 16, 8):
        if n_rows % t == 0 and t * lane_width * itemsize <= max_tile_bytes:
            return t
    return n_rows  # full-extent block is always a legal block shape


def ada_res_norm(x, rho, gamma, beta, eps):
    N, C, H, W = x.shape
    CW = C * W
    R = N * H
    assert CW > 1, "unbiased variance needs C*W > 1 (divisor C*W - 1)"

    # Lane-dense layout: rows = (n, h), lanes = (c, w). Reduction axis = lanes.
    x2 = jnp.transpose(x, (0, 2, 1, 3)).reshape(R, CW)

    # Per-channel (1,C,1,1) params -> lane vectors (1, C*W): each channel value
    # repeated W times, matching the (c, w) lane flattening above.
    def to_lane_vec(p):
        return jnp.repeat(p.reshape(C).astype(jnp.float32), W).reshape(1, CW)

    rho_f = rho.astype(jnp.float32)
    gamma_f = gamma.astype(jnp.float32)
    a_vec = to_lane_vec(gamma_f * rho_f)            # gamma * rho
    b_vec = to_lane_vec(gamma_f * (1.0 - rho_f))    # gamma * (1 - rho)
    beta_vec = to_lane_vec(beta)
    eps_vec = to_lane_vec(eps)

    TR = _pick_row_tile(R, CW, 4)  # tile picked for the f32 compute footprint

    itemsize = jnp.dtype(x.dtype).itemsize
    cost = pl.CostEstimate(
        flops=10 * N * C * H * W,
        transcendentals=N * C * H * W,
        bytes_accessed=2 * N * C * H * W * itemsize + 4 * CW * 4,
    )

    param_spec = pl.BlockSpec((1, CW), lambda i: (0, 0))
    row_spec = pl.BlockSpec((TR, CW), lambda i: (i, 0))

    out2 = pl.pallas_call(
        _ada_res_norm_kernel,
        out_shape=jax.ShapeDtypeStruct((R, CW), x.dtype),
        grid_spec=pltpu.PrefetchScalarGridSpec(
            num_scalar_prefetch=0,
            grid=(R // TR,),
            in_specs=[
                row_spec,      # x rows
                param_spec,    # a = gamma*rho
                param_spec,    # b = gamma*(1-rho)
                param_spec,    # beta
                param_spec,    # eps
            ],
            out_specs=row_spec,
        ),
        compiler_params=pltpu.CompilerParams(
            dimension_semantics=("parallel",),
        ),
        cost_estimate=cost,
    )(x2, a_vec, b_vec, beta_vec, eps_vec)

    return jnp.transpose(out2.reshape(N, H, C, W), (0, 2, 1, 3))


def ada_res_norm_ref(x, rho, gamma, beta, eps):
    # pure-JAX reference mirroring the PyTorch forward (unbiased var, grad=True)
    mean = jnp.mean(x, axis=(1, 3), keepdims=True)
    n_red = x.shape[1] * x.shape[3]
    var = jnp.sum((x - mean) ** 2, axis=(1, 3), keepdims=True) / (n_red - 1)
    ifn = (x - mean) / jnp.sqrt(var + eps)
    res_norm = rho * x + (1.0 - rho) * ifn
    return gamma * res_norm + beta


if __name__ == "__main__":
    key = jax.random.PRNGKey(0)
    N, C, H, W = 2, 4, 16, 16
    x = jax.random.normal(key, (N, C, H, W), dtype=jnp.float32)

    # Deterministic parameter init, matching AdaResNorm.__init__ (grad=True)
    eps = jnp.full((1, C, 1, 1), 1e-5, dtype=jnp.float32)
    rho = jnp.full((1, C, 1, 1), 0.5, dtype=jnp.float32)
    gamma = jnp.ones((1, C, 1, 1), dtype=jnp.float32)
    beta = jnp.zeros((1, C, 1, 1), dtype=jnp.float32)

    out = jax.block_until_ready(ada_res_norm(x, rho, gamma, beta, eps))
    ref = ada_res_norm_ref(x, rho, gamma, beta, eps)

    assert out.shape == (N, C, H, W)
    assert jnp.allclose(out, ref, atol=1e-5, rtol=1e-5)
    print("KERNEL_OK")
</pallas_src>

<mosaic_0001>
module attributes {stable_mosaic.version = 11 : i64} {
  func.func @_ada_res_norm_kernel(%arg0: i32, %arg1: memref<32x64xf32, #tpu.memory_space<vmem>>, %arg2: memref<1x64xf32, #tpu.memory_space<vmem>>, %arg3: memref<1x64xf32, #tpu.memory_space<vmem>>, %arg4: memref<1x64xf32, #tpu.memory_space<vmem>>, %arg5: memref<1x64xf32, #tpu.memory_space<vmem>>, %arg6: memref<32x64xf32, #tpu.memory_space<vmem>>) attributes {dimension_semantics = [#tpu.dimension_semantics<parallel>], iteration_bounds = array<i64: 1>, scalar_prefetch = 0 : i64, scratch_operands = 0 : i64, tpu.core_type = #tpu.core_type<tc>, window_params = [{transform_indices = @transform_0, window_bounds = array<i64: 32, 64>}, {pipeline_mode = #tpu.pipeline_mode<synchronous>, transform_indices = @transform_1, window_bounds = array<i64: 1, 64>}, {pipeline_mode = #tpu.pipeline_mode<synchronous>, transform_indices = @transform_2, window_bounds = array<i64: 1, 64>}, {pipeline_mode = #tpu.pipeline_mode<synchronous>, transform_indices = @transform_3, window_bounds = array<i64: 1, 64>}, {pipeline_mode = #tpu.pipeline_mode<synchronous>, transform_indices = @transform_4, window_bounds = array<i64: 1, 64>}, {transform_indices = @transform_5, window_bounds = array<i64: 32, 64>}]} {
    %c0 = arith.constant 0 : index
    %c0_0 = arith.constant 0 : index
    %0 = vector.load %arg1[%c0, %c0_0] : memref<32x64xf32, #tpu.memory_space<vmem>>, vector<32x64xf32>
    %cst = arith.constant dense<0.000000e+00> : vector<32xf32>
    %1 = vector.multi_reduction <add>, %0, %cst [1] : vector<32x64xf32> to vector<32xf32>
    %2 = vector.shape_cast %1 : vector<32xf32> to vector<32x1xf32>
    %cst_1 = arith.constant 6.400000e+01 : f32
    %3 = vector.broadcast %cst_1 : f32 to vector<32x1xf32>
    %4 = arith.divf %2, %3 : vector<32x1xf32>
    %5 = vector.broadcast %4 : vector<32x1xf32> to vector<32x64xf32>
    %6 = arith.subf %0, %5 : vector<32x64xf32>
    %7 = arith.mulf %6, %6 : vector<32x64xf32>
    %cst_2 = arith.constant dense<0.000000e+00> : vector<32xf32>
    %8 = vector.multi_reduction <add>, %7, %cst_2 [1] : vector<32x64xf32> to vector<32xf32>
    %9 = vector.shape_cast %8 : vector<32xf32> to vector<32x1xf32>
    %cst_3 = arith.constant 0.0158730168 : f32
    %10 = vector.broadcast %cst_3 : f32 to vector<32x1xf32>
    %11 = arith.mulf %9, %10 : vector<32x1xf32>
    %c0_4 = arith.constant 0 : index
    %c0_5 = arith.constant 0 : index
    %12 = vector.load %arg5[%c0_4, %c0_5] : memref<1x64xf32, #tpu.memory_space<vmem>>, vector<1x64xf32>
    %13 = vector.broadcast %11 : vector<32x1xf32> to vector<32x64xf32>
    %14 = vector.broadcast %12 : vector<1x64xf32> to vector<32x64xf32>
    %15 = arith.addf %13, %14 : vector<32x64xf32>
    %16 = math.rsqrt %15 : vector<32x64xf32>
    %c0_6 = arith.constant 0 : index
    %c0_7 = arith.constant 0 : index
    %17 = vector.load %arg2[%c0_6, %c0_7] : memref<1x64xf32, #tpu.memory_space<vmem>>, vector<1x64xf32>
    %18 = vector.broadcast %17 : vector<1x64xf32> to vector<32x64xf32>
    %19 = arith.mulf %18, %0 : vector<32x64xf32>
    %c0_8 = arith.constant 0 : index
    %c0_9 = arith.constant 0 : index
    %20 = vector.load %arg3[%c0_8, %c0_9] : memref<1x64xf32, #tpu.memory_space<vmem>>, vector<1x64xf32>
    %21 = arith.mulf %6, %16 : vector<32x64xf32>
    %22 = vector.broadcast %20 : vector<1x64xf32> to vector<32x64xf32>
    %23 = arith.mulf %22, %21 : vector<32x64xf32>
    %24 = arith.addf %19, %23 : vector<32x64xf32>
    %c0_10 = arith.constant 0 : index
    %c0_11 = arith.constant 0 : index
    %25 = vector.load %arg4[%c0_10, %c0_11] : memref<1x64xf32, #tpu.memory_space<vmem>>, vector<1x64xf32>
    %26 = vector.broadcast %25 : vector<1x64xf32> to vector<32x64xf32>
    %27 = arith.addf %24, %26 : vector<32x64xf32>
    %c0_12 = arith.constant 0 : index
    %c0_13 = arith.constant 0 : index
    %28 = vector.load %arg6[%c0_12, %c0_13] : memref<32x64xf32, #tpu.memory_space<vmem>>, vector<32x64xf32>
    tpu.vector_store %arg6[%c0_12, %c0_13], %27 {strides = array<i32>} : memref<32x64xf32, #tpu.memory_space<vmem>>, vector<32x64xf32>,
    return
  }
  func.func @transform_0(%arg0: i32) -> (i32, i32) {
    %c0_i32 = arith.constant 0 : i32
    %c0_i32_0 = arith.constant 0 : i32
    return %arg0, %c0_i32 : i32, i32
  }
  func.func @transform_1(%arg0: i32) -> (i32, i32) {
    %c0_i32 = arith.constant 0 : i32
    %c0_i32_0 = arith.constant 0 : i32
    %c0_i32_1 = arith.constant 0 : i32
    return %c0_i32, %c0_i32_0 : i32, i32
  }
  func.func @transform_2(%arg0: i32) -> (i32, i32) {
    %c0_i32 = arith.constant 0 : i32
    %c0_i32_0 = arith.constant 0 : i32
    %c0_i32_1 = arith.constant 0 : i32
    return %c0_i32, %c0_i32_0 : i32, i32
  }
  func.func @transform_3(%arg0: i32) -> (i32, i32) {
    %c0_i32 = arith.constant 0 : i32
    %c0_i32_0 = arith.constant 0 : i32
    %c0_i32_1 = arith.constant 0 : i32
    return %c0_i32, %c0_i32_0 : i32, i32
  }
  func.func @transform_4(%arg0: i32) -> (i32, i32) {
    %c0_i32 = arith.constant 0 : i32
    %c0_i32_0 = arith.constant 0 : i32
    %c0_i32_1 = arith.constant 0 : i32
    return %c0_i32, %c0_i32_0 : i32, i32
  }
  func.func @transform_5(%arg0: i32) -> (i32, i32) {
    %c0_i32 = arith.constant 0 : i32
    %c0_i32_0 = arith.constant 0 : i32
    return %arg0, %c0_i32 : i32, i32
  }
}

</mosaic_0001>

<bundles_post_ra>
// kernel: tpu_custom_call.1
= control target key start
LH: loop header
LB: loop body
LE: loop exit
PB: predicated region body
PF: predicated region fallthrough
CT: control target
= control target key end

     0   :  { %10 = vsyncpa [#allocation3], 0  ;;  %s298_s0 = inlined_call_operand.hbm [shape: f32[32,64], index: 0, kind: input, shape index: {}]   ;;  %s299_s1 = inlined_call_operand.vmem [shape: f32[1,64], index: 1, kind: input, shape index: {}]   ;;  %s300_s2 = inlined_call_operand.vmem [shape: f32[1,64], index: 2, kind: input, shape index: {}]   ;;  %s301_s3 = inlined_call_operand.vmem [shape: f32[1,64], index: 3, kind: input, shape index: {}]   ;;  %s302_s4 = inlined_call_operand.vmem [shape: f32[1,64], index: 4, kind: input, shape index: {}]   ;;  %s303_s5 = inlined_call_operand.hbm [shape: f32[32,64], index: 5, kind: output, shape index: {}]  }
   0x1   :  { %11 = vsyncpa [#allocation4], 0  ;;  %s218_s18 = smov [#allocation2]  }
   0x2   :  { %s17_s19 = sshll.u32 %s218_s18, 4  ;;  %s18_s19 = int_to_ptr.vmem [resolvable:$true] %s17_s19 }
   0x3   :  { %s182_s20 = scalar_lea.vmem %s18_s19, 512  ;;  %p187_p1 = scmp.lt.s32.totalorder %s18_s19, %s18_s19 }
   0x4   :  { %p183_p0 = scmp.ne.s32.totalorder %s18_s19, %s182_s20  ;;  %p188_p2 = scmp.lt.s32.totalorder %s182_s20, %s182_s20 }
   0x6   :  { %p189_p3 = por %p188_p2, %p187_p1 }
   0x8   :  { %p190_p4 = pnand %p189_p3, %p183_p0 }
   0xa   :  { %193 = shalt.err (!%p190_p4)
}
   0xb   :  { %s219_s21 = smov 128   ;;  %s220_s22 = smov 8  }
   0xc   :  { %23 = dma.hbm_to_vmem [thread:$0]  %s298_s0, 512, %s18_s19, [#allocation3], %s219_s21, %s219_s21, %s220_s22  }
   0xd   :  { %214 = dma.done.wait [#allocation3], 512  }
   0xe   :  { %215 = vsyncadd [#allocation3], 4294966784  ;;  %vm39_vm0 = vcmask 523264   ;;  %v35_v0 = vld [vmem:[#allocation2] sm:$0xff]  ;;  %v258_v1 = vld [vmem:[#allocation2 + $0x10] sm:$0xff] }
   0xf   :  { %v40_v2 = vsel %vm39_vm0, %v35_v0, 0.0  ;;  %v46_v3 = vsel %vm39_vm0, %v258_v1, 0.0  ;;  %v36_v4 = vld [vmem:[#allocation2 + $0x8] sm:$0xff]  ;;  %v263_v5 = vld [vmem:[#allocation2 + $0x18] sm:$0xff]  ;;  %v158_v28 = vld [vmem:[%s302_s4] ss:$0 sm:$0xff] }
  0x10   :  { %41 = vadd.xlane.f32.xlu0 %v40_v2  ;;  %47 = vadd.xlane.f32.xlu1 %v46_v3  ;;  %v43_v6 = vsel %vm39_vm0, %v36_v4, 0.0  ;;  %v49_v7 = vsel %vm39_vm0, %v263_v5, 0.0  ;;  %v159_v41 = vld [vmem:[%s299_s1] ss:$0 sm:$0xff]  ;;  %s221_s1 = smov [#allocation5]  }
  0x11   :  { %v160_v43 = vld [vmem:[%s300_s2] ss:$0 sm:$0xff]  ;;  %v103_v44 = vmul.f32 %v159_v41, %v35_v0  ;;  %v104_v50 = vmul.f32 %v159_v41, %v36_v4  ;;  %v105_v53 = vmul.f32 %v159_v41, %v258_v1  ;;  %v106_v59 = vmul.f32 %v159_v41, %v263_v5  ;;  %s146_s2 = sshll.u32 %s221_s1, 4  ;;  %s147_s2 = int_to_ptr.vmem [resolvable:$true] %s146_s2 }
  0x12   :  { %v161_v48 = vld [vmem:[%s301_s3] ss:$0 sm:$0xff]  ;;  %s194_s3 = scalar_lea.vmem %s147_s2, 512  ;;  %p199_p6 = scmp.lt.s32.totalorder %s147_s2, %s147_s2 }
  0x13   :  { %p195_p5 = scmp.ne.s32.totalorder %s147_s2, %s194_s3  ;;  %p200_p7 = scmp.lt.s32.totalorder %s194_s3, %s194_s3 }
  0x14   :  { %44 = vadd.xlane.f32.xlu0 %v43_v6  ;;  %50 = vadd.xlane.f32.xlu1 %v49_v7 }
  0x15   :  { %p201_p8 = por %p200_p7, %p199_p6 }
  0x17   :  { %p202_p9 = pnand %p201_p8, %p195_p5 }
  0x99   :  { %v42_v8 = vpop.xlane.xlu0 %41  ;;  %v48_v9 = vpop.xlane.xlu1 %47 }
  0x9a   :  { %v53_v10 = vmul.f32 0.015625, %v42_v8  ;;  %v55_v11 = vmul.f32 0.015625, %v48_v9 }
  0x9c   :  { %v57_v12 = vsub.f32 %v35_v0, %v53_v10  ;;  %v59_v13 = vsub.f32 %v258_v1, %v55_v11 }
  0x9d   :  { %v45_v14 = vpop.xlane.xlu0 %44  ;;  %v51_v15 = vpop.xlane.xlu1 %50 }
  0x9e   :  { %v54_v16 = vmul.f32 0.015625, %v45_v14  ;;  %v56_v17 = vmul.f32 0.015625, %v51_v15  ;;  %v61_v18 = vmul.f32 %v57_v12, %v57_v12  ;;  %v63_v19 = vmul.f32 %v59_v13, %v59_v13 }
  0xa0   :  { %v58_v20 = vsub.f32 %v36_v4, %v54_v16  ;;  %v60_v21 = vsub.f32 %v263_v5, %v56_v17  ;;  %v65_v22 = vsel %vm39_vm0, %v61_v18, 0.0  ;;  %v71_v23 = vsel %vm39_vm0, %v63_v19, 0.0 }
  0xa1   :  { %66 = vadd.xlane.f32.xlu0 %v65_v22 }
  0xa2   :  { %v62_v24 = vmul.f32 %v58_v20, %v58_v20  ;;  %v64_v25 = vmul.f32 %v60_v21, %v60_v21 }
  0xa4   :  { %v68_v26 = vsel %vm39_vm0, %v62_v24, 0.0  ;;  %v74_v27 = vsel %vm39_vm0, %v64_v25, 0.0 }
  0xa5   :  { %72 = vadd.xlane.f32.xlu0 %v71_v23  ;;  %69 = vadd.xlane.f32.xlu1 %v68_v26 }
  0xa9   :  { %75 = vadd.xlane.f32.xlu1 %v74_v27 }
 0x12a   :  { %v67_v29 = vpop.xlane.xlu0 %66 }
 0x12b   :  { %v77_v30 = vmul.f32 0.015873017, %v67_v29 }
 0x12d   :  { %v88_v31 = vadd.f32 %v158_v28, %v77_v30 }
 0x12e   :  { %v70_v32 = vpop.xlane.xlu1 %69  ;;  %v73_v33 = vpop.xlane.xlu0 %72 }
 0x12f   :  { %166 = vrsqrt.f32 %v88_v31  ;;  %v78_v34 = vmul.f32 0.015873017, %v70_v32  ;;  %v79_v35 = vmul.f32 0.015873017, %v73_v33 }
 0x131   :  { %v89_v36 = vadd.f32 %v158_v28, %v78_v34  ;;  %v90_v37 = vadd.f32 %v158_v28, %v79_v35 }
 0x132   :  { %v76_v38 = vpop.xlane.xlu1 %75 }
 0x133   :  { %168 = vrsqrt.f32 %v89_v36  ;;  %v80_v39 = vmul.f32 0.015873017, %v76_v38 }
 0x134   :  { %170 = vrsqrt.f32 %v90_v37 }
 0x135   :  { %v91_v40 = vadd.f32 %v158_v28, %v80_v39 }
 0x137   :  { %172 = vrsqrt.f32 %v91_v40 }
 0x13c   :  { %v167_v42 = vpop.eup %166 }
 0x13d   :  { %v108_v45 = vmul.f32 %v167_v42, %v57_v12 }
 0x13f   :  { %v118_v46 = vmul.f32 %v160_v43, %v108_v45 }
 0x140   :  { %v169_v47 = vpop.eup %168 }
 0x141   :  { %v171_v49 = vpop.eup %170  ;;  %v109_v51 = vmul.f32 %v169_v47, %v58_v20  ;;  %v122_v52 = vadd.f32 %v118_v46, %v103_v44 }
 0x142   :  { %v110_v54 = vmul.f32 %v171_v49, %v59_v13 }
 0x143   :  { %v119_v55 = vmul.f32 %v160_v43, %v109_v51  ;;  %v133_v56 = vadd.f32 %v161_v48, %v122_v52 }
 0x144   :  { %v173_v57 = vpop.eup %172  ;;  %v120_v58 = vmul.f32 %v160_v43, %v110_v54 }
 0x145   :  { %v111_v60 = vmul.f32 %v173_v57, %v60_v21  ;;  %v123_v61 = vadd.f32 %v119_v55, %v104_v50  ;;  %137 = vst.msk [vmem:[#allocation5] sm:$0xff] %vm39_vm0, %v133_v56 }
 0x146   :  { %v124_v62 = vadd.f32 %v120_v58, %v105_v53 }
 0x147   :  { %v121_v63 = vmul.f32 %v160_v43, %v111_v60  ;;  %v134_v0 = vadd.f32 %v161_v48, %v123_v61 }
 0x148   :  { %v135_v2 = vadd.f32 %v161_v48, %v124_v62 }
 0x149   :  { %v125_v3 = vadd.f32 %v121_v63, %v106_v59  ;;  %138 = vst.msk [vmem:[#allocation5 + $0x8] sm:$0xff] %vm39_vm0, %v134_v0 }
 0x14a   :  { %139 = vst.msk [vmem:[#allocation5 + $0x10] sm:$0xff] %vm39_vm0, %v135_v2 }
 0x14b   :  { %v136_v1 = vadd.f32 %v161_v48, %v125_v3 }
 0x14d   :  { %140 = vst.msk [vmem:[#allocation5 + $0x18] sm:$0xff] %vm39_vm0, %v136_v1 }
 0x14e   :  { %205 = shalt.err (!%p202_p9)
}
 0x14f   :  { %152 = dma.vmem_to_hbm [thread:$0]  %s147_s2, 512, %s303_s5, [#allocation4], %s219_s21, %s219_s21, %s220_s22  }
 0x150   :  { %216 = dma.done.wait [#allocation4], 512  }
 0x151   :  { %217 = vsyncadd [#allocation4], 4294966784 }
 0x152   :  { %156 = vsyncpa [#allocation3], 1 }
 0x153   :  { %157 = vsyncpa [#allocation4], 1 }

</bundles_post_ra>
